<compile_context>
chip_gen: v7x
topology: tpu7x:2x2x1
jax: 0.10.0
libtpu: 0.0.40
codegen_flags: <defaults>
</compile_context>

<pallas_src>
import jax
import jax.numpy as jnp
from jax.experimental import pallas as pl
from jax.experimental.pallas import tpu as pltpu

_LANES = 128                       # f32 vreg lane width
_DEF_BLOCK_COLS = 512 * 1024       # 2 MiB f32 per block (good for v5e/v6e/v7x)
_FAST_PATH_MAX_BYTES = 1 << 20     # below this, plain jnp beats a kernel launch


def _affine_kernel(x_ref, wb_ref, o_ref):
    # Linear(1, 1) applied elementwise on a lane-dense tile: y = x * w + b
    w = wb_ref[0]
    b = wb_ref[1]
    o_ref[...] = x_ref[...] * w + b


def _round_up(a, m):
    return ((a + m - 1) // m) * m


def net_forward(x, weight, bias, *, block_cols=_DEF_BLOCK_COLS,
                force_kernel=False):
    """Forward pass of Net: y = x @ weight.T + bias.

    x:      (N, 1) float32 (PyTorch `x.reshape(-1, 1).float()` convention)
    weight: (1, 1) float32 (nn.Linear(1, 1).weight shape)
    bias:   (1,)   float32 (nn.Linear(1, 1).bias shape)
    returns (N, 1) float32
    """
    orig_shape = x.shape
    n = x.size

    x = x.astype(jnp.float32)
    w = weight.reshape(()).astype(jnp.float32)
    b = bias.reshape(()).astype(jnp.float32)

    # Fast path: empty input, or small enough that the pallas_call launch
    # would dominate wall time -> one fused XLA elementwise op.
    if n == 0 or (not force_kernel and n * 4 < _FAST_PATH_MAX_BYTES):
        return (x * w + b).reshape(orig_shape)

    # --- Lane-dense, copy-free layout: (N, 1) -> (1, N) is a free reshape ---
    x_2d = x.reshape(1, n)

    # Block width: multiple of 128 lanes, no larger than needed for small N.
    bc = max(_LANES, _round_up(min(block_cols, n), _LANES))
    grid = (pl.cdiv(n, bc),)      # partial trailing block handled by Pallas

    # Scalars in 1-D SMEM: [w, b]
    wb = jnp.stack([w, b])

    out = pl.pallas_call(
        _affine_kernel,
        out_shape=jax.ShapeDtypeStruct((1, n), jnp.float32),
        grid=grid,
        in_specs=[
            pl.BlockSpec((1, bc), lambda i: (0, i)),              # x tiles
            pl.BlockSpec(memory_space=pltpu.MemorySpace.SMEM),    # [w, b]
        ],
        out_specs=pl.BlockSpec((1, bc), lambda i: (0, i)),
        compiler_params=pltpu.CompilerParams(
            dimension_semantics=("parallel",),
        ),
        cost_estimate=pl.CostEstimate(
            flops=2 * n, transcendentals=0, bytes_accessed=8 * n + 8),
    )(x_2d, wb)

    # (1, N) -> (N, 1): free metadata reshape, no slicing / copying.
    return out.reshape(orig_shape)


if __name__ == "__main__":
    key = jax.random.PRNGKey(0)
    kx, kw, kb = jax.random.split(key, 3)

    # Batch of scalar samples in the (N, 1) layout the module expects.
    # N deliberately NOT a multiple of 128 to exercise the partial-block path.
    N = 1000
    x = jax.random.normal(kx, (N, 1), dtype=jnp.float32)

    # Deterministic parameter init (mimics nn.Linear(1, 1) uniform init).
    weight = jax.random.uniform(kw, (1, 1), minval=-1.0, maxval=1.0,
                                dtype=jnp.float32)
    bias = jax.random.uniform(kb, (1,), minval=-1.0, maxval=1.0,
                              dtype=jnp.float32)

    y_ref = x @ weight.T + bias

    # 1) Pallas kernel path: single (partial) block.
    y1 = jax.block_until_ready(net_forward(x, weight, bias, force_kernel=True))

    # 2) Pallas kernel path: multi-step pipelined grid with a partial
    #    trailing block (cdiv grid, masked edge writes).
    y2 = jax.block_until_ready(
        net_forward(x, weight, bias, force_kernel=True, block_cols=256))

    # 3) Auto path: small-N fused-jnp fast path.
    y3 = jax.block_until_ready(net_forward(x, weight, bias))

    for y in (y1, y2, y3):
        assert y.shape == (N, 1)
        assert jnp.allclose(y, y_ref, atol=1e-6, rtol=1e-6)

    print("KERNEL_OK")
</pallas_src>

<mosaic_0001>
module attributes {stable_mosaic.version = 11 : i64} {
  func.func @_affine_kernel(%arg0: i32, %arg1: memref<1x1024xf32, #tpu.memory_space<vmem>>, %arg2: memref<2xf32, #tpu.memory_space<smem>>, %arg3: memref<1x1024xf32, #tpu.memory_space<vmem>>) attributes {dimension_semantics = [#tpu.dimension_semantics<parallel>], iteration_bounds = array<i64: 1>, scalar_prefetch = 0 : i64, scratch_operands = 0 : i64, tpu.core_type = #tpu.core_type<tc>, window_params = [{transform_indices = @transform_0, window_bounds = array<i64: 1, 1024>}, {transform_indices = @transform_1, window_bounds = array<i64: 2>}, {transform_indices = @transform_2, window_bounds = array<i64: 1, 1024>}]} {
    %c0 = arith.constant 0 : index
    %0 = memref.load %arg2[%c0] : memref<2xf32, #tpu.memory_space<smem>>
    %c1 = arith.constant 1 : index
    %1 = memref.load %arg2[%c1] : memref<2xf32, #tpu.memory_space<smem>>
    %c0_0 = arith.constant 0 : index
    %c0_1 = arith.constant 0 : index
    %2 = vector.load %arg1[%c0_0, %c0_1] : memref<1x1024xf32, #tpu.memory_space<vmem>>, vector<1x1024xf32>
    %3 = vector.broadcast %0 : f32 to vector<1x1024xf32>
    %4 = arith.mulf %2, %3 : vector<1x1024xf32>
    %5 = vector.broadcast %1 : f32 to vector<1x1024xf32>
    %6 = arith.addf %4, %5 : vector<1x1024xf32>
    %c0_2 = arith.constant 0 : index
    %c0_3 = arith.constant 0 : index
    %7 = vector.load %arg3[%c0_2, %c0_3] : memref<1x1024xf32, #tpu.memory_space<vmem>>, vector<1x1024xf32>
    tpu.vector_store %arg3[%c0_2, %c0_3], %6 {strides = array<i32>} : memref<1x1024xf32, #tpu.memory_space<vmem>>, vector<1x1024xf32>,
    return
  }
  func.func @transform_0(%arg0: i32) -> (i32, i32) {
    %c0_i32 = arith.constant 0 : i32
    %c0_i32_0 = arith.constant 0 : i32
    return %c0_i32, %arg0 : i32, i32
  }
  func.func @transform_1(%arg0: i32) -> i32 {
    %c0_i32 = arith.constant 0 : i32
    %c0_i32_0 = arith.constant 0 : i32
    return %c0_i32 : i32
  }
  func.func @transform_2(%arg0: i32) -> (i32, i32) {
    %c0_i32 = arith.constant 0 : i32
    %c0_i32_0 = arith.constant 0 : i32
    return %c0_i32, %arg0 : i32, i32
  }
}

</mosaic_0001>

<bundles_post_ra>
// kernel: tpu_custom_call.1
= control target key start
LH: loop header
LB: loop body
LE: loop exit
PB: predicated region body
PF: predicated region fallthrough
CT: control target
= control target key end

     0   :  { %7 = vsyncpa [#allocation3], 0  ;;  %s172_s0 = inlined_call_operand.hbm [shape: f32[1,1000], index: 0, kind: input, shape index: {}]   ;;  %s173_s1 = inlined_call_operand.vmem [shape: f32[2], index: 1, kind: input, shape index: {}]   ;;  %s174_s2 = inlined_call_operand.hbm [shape: f32[1,1000], index: 2, kind: output, shape index: {}]  }
   0x1   :  { %8 = vsyncpa [#allocation5], 0 }
   0x2   :  { %9 = vsyncpa [#allocation4], 0  ;;  %s26_s11 = sshll.u32 %s173_s1, 4  ;;  %s127_s12 = smov [#allocation2]   ;;  %s27_s11 = int_to_ptr.vmem [resolvable:$true] %s26_s11 }
   0x3   :  { %s16_s13 = sshll.u32 %s127_s12, 4  ;;  %s65_s16 = scalar_lea.hbm %s172_s0, 128  ;;  %s17_s13 = int_to_ptr.vmem [resolvable:$true] %s16_s13 }
   0x4   :  { %p66_p0 = scmp.ne.s32.totalorder %s172_s0, %s65_s16  ;;  %p69_p1 = scmp.lt.u32.totalorder %s65_s16, %s172_s0 }
   0x6   :  { %p71_p2 = pnand %p69_p1, %p66_p0 }
   0x8   :  { %74 = shalt.err (!%p71_p2)
}
   0x9   :  { %s75_s21 = scalar_lea.vmem %s17_s13, 128  ;;  %p80_p4 = scmp.lt.s32.totalorder %s17_s13, %s17_s13 }
   0xa   :  { %p76_p3 = scmp.ne.s32.totalorder %s17_s13, %s75_s21  ;;  %p81_p5 = scmp.lt.s32.totalorder %s75_s21, %s75_s21 }
   0xc   :  { %p82_p6 = por %p81_p5, %p80_p4 }
   0xe   :  { %p83_p7 = pnand %p82_p6, %p76_p3 }
  0x10   :  { %86 = shalt.err (!%p83_p7)
}
  0x11   :  { %19 = dma.hbm_to_vmem [thread:$0]  %s172_s0, 128, %s17_s13, [#allocation3]  }
  0x12   :  { %s87_s23 = scalar_lea.vmem %s27_s11, 16  ;;  %p92_p9 = scmp.lt.s32.totalorder %s27_s11, %s27_s11 }
  0x13   :  { %p88_p8 = scmp.ne.s32.totalorder %s27_s11, %s87_s23  ;;  %p93_p10 = scmp.lt.s32.totalorder %s87_s23, %s87_s23 }
  0x15   :  { %p94_p11 = por %p93_p10, %p92_p9 }
  0x17   :  { %p95_p12 = pnand %p94_p11, %p88_p8 }
  0x19   :  { %98 = shalt.err (!%p95_p12)
}
  0x1a   :  { %s128_s24 = smov [#allocation6]  }
  0x1b   :  { %29 = dma.vmem_to_smem %s27_s11, 16, %s128_s24, [#allocation5]  }
  0x1c   :  { %121 = dma.done.wait [#allocation3], 128  }
  0x1d   :  { %122 = vsyncadd [#allocation3], 4294967168 }
  0x1e   :  { %123 = dma.done.wait [#allocation5], 16  }
  0x1f   :  { %124 = vsyncadd [#allocation5], 4294967280 }
  0x20   :  { %36 = sfence }
  0x21   :  { %s37_s25 = sld [smem:[#allocation6]]  ;;  %s61_s26 = sld [smem:[#allocation6 + $0x1]]  ;;  %v39_v0 = vld [vmem:[#allocation2] sm:$0xff] }
  0x22   :  { %s129_s0 = smov [#allocation7]  }
  0x23   :  { %s51_s27 = sshll.u32 %s129_s0, 4  ;;  %s52_s27 = int_to_ptr.vmem [resolvable:$true] %s51_s27 }
  0x24   :  { %s99_s28 = scalar_lea.vmem %s52_s27, 128  ;;  %p104_p0 = scmp.lt.s32.totalorder %s52_s27, %s52_s27 }
  0x25   :  { %p100_p13 = scmp.ne.s32.totalorder %s52_s27, %s99_s28  ;;  %p105_p1 = scmp.lt.s32.totalorder %s99_s28, %s99_s28 }
  0x27   :  { %v40_v1 = vstv %s37_s25  ;;  %v42_v2 = vstv %s61_s26  ;;  %p106_p2 = por %p105_p1, %p104_p0 }
  0x28   :  { %v41_v3 = vmul.f32 %v40_v1, %v39_v0 }
  0x29   :  { %p107_p3 = pnand %p106_p2, %p100_p13 }
  0x2a   :  { %v43_v4 = vadd.f32 %v42_v2, %v41_v3 }
  0x2c   :  { %44 = vst [vmem:[#allocation7] sm:$0xff] %v43_v4 }
  0x2d   :  { %110 = shalt.err (!%p107_p3)
}
  0x2e   :  { %s111_s3 = scalar_lea.hbm %s174_s2, 128 }
  0x2f   :  { %p112_p4 = scmp.ne.s32.totalorder %s174_s2, %s111_s3  ;;  %p115_p5 = scmp.lt.u32.totalorder %s111_s3, %s174_s2 }
  0x31   :  { %p117_p6 = pnand %p115_p5, %p112_p4 }
  0x33   :  { %120 = shalt.err (!%p117_p6)
}
  0x34   :  { %54 = dma.vmem_to_hbm [thread:$0]  %s52_s27, 128, %s174_s2, [#allocation4]  }
  0x35   :  { %125 = dma.done.wait [#allocation4], 128  }
  0x36   :  { %126 = vsyncadd [#allocation4], 4294967168 }
  0x37   :  { %58 = vsyncpa [#allocation3], 1 }
  0x38   :  { %59 = vsyncpa [#allocation4], 1 }
  0x39   :  { %60 = vsyncpa [#allocation5], 1 }

</bundles_post_ra>
